<compile_context>
chip_gen: v5e
topology: v5e:2x2
jax: 0.10.0
libtpu: 0.0.40
codegen_flags: <defaults>
</compile_context>

<pallas_src>
import functools

import jax
import jax.numpy as jnp
from jax.experimental import pallas as pl
from jax.experimental.pallas import tpu as pltpu

H = 64          # real hidden size
HP = 128        # padded h/c lane width (one lane group)
G4 = 4 * H      # 256: packed gate width, two gates per 128-lane group: [i|f][g|o]
F1 = 25         # real fc1 width
F1P = 128       # padded fc1 width
OUTP = 128      # padded output width (real output sliced out in the wrapper)


def lstm_head_kernel(x_ref, wih_ref, b_ref, whh_ref, head_ref, out_ref, gx_ref,
                     *, num_steps, batch):
    T, B = num_steps, batch

    # Hoisted input projection + gate bias for ALL timesteps: one MXU matmul, parked in a
    # VMEM scratch so it does not stay live in vregs across the unrolled recurrence.
    gx_ref[...] = (jnp.dot(x_ref[...], wih_ref[...], preferred_element_type=jnp.float32)
                   + b_ref[...])                                  # (T*B, 256)

    # Hoisted lane constants for the dual-activation trick on the [g|o] group:
    # lanes 0:63 need tanh, lanes 64:127 need sigmoid = 0.5*tanh(0.5x)+0.5.
    lane = jax.lax.broadcasted_iota(jnp.int32, (B, HP), 1)
    is_g = lane < H
    scale = jnp.where(is_g, 1.0, 0.5).astype(jnp.float32)    # 1 on g lanes, 0.5 on o lanes
    offset = jnp.where(is_g, 0.0, 0.5).astype(jnp.float32)   # 0 on g lanes, 0.5 on o lanes

    h = jnp.zeros((B, HP), jnp.float32)
    c = jnp.zeros((B, HP), jnp.float32)

    # Fully unrolled recurrence (T static): one (B,128)@(128,256) MXU matmul per step,
    # 3 EUP ops per step, two XLU rolls; W_hh streamed from VMEM each step.
    for t in range(T):
        gates = gx_ref[t * B:(t + 1) * B, :] + jnp.dot(
            h, whh_ref[...], preferred_element_type=jnp.float32)   # (B, 256)
        gA = gates[:, 0:HP]          # [i_pre | f_pre]  (both sigmoid)
        gB = gates[:, HP:2 * HP]     # [g_pre | o_pre]  (tanh | sigmoid)
        sigA = jnp.tanh(gA * 0.5) * 0.5 + 0.5                     # [sig(i) | sig(f)]
        actB = jnp.tanh(gB * scale) * scale + offset              # [tanh(g) | sig(o)]
        rollA = pltpu.roll(sigA, shift=H, axis=1)                 # [sig(f) | sig(i)]
        rollB = pltpu.roll(actB, shift=H, axis=1)                 # [sig(o) | tanh(g)]
        # Upper 64 lanes of c/h hold bounded garbage; every weight row for those lanes is 0.
        c = rollA * c + sigA * actB
        h = rollB * jnp.tanh(c)

    # Head: dropout (eval -> identity), fc1 + ReLU, fc2.  All weights/biases live in one
    # packed (258, 128) buffer; zero-padding keeps the math exact and the final store is a
    # full (B, 128) unmasked lane-dense slab.
    w1 = head_ref[0:HP, :]                 # (128, 128)  rows 64:128 zero
    w2 = head_ref[HP:2 * HP, :]            # (128, 128)  rows 25:128 zero
    b1 = head_ref[2 * HP:2 * HP + 1, :]    # (1, 128)
    b2 = head_ref[2 * HP + 1:2 * HP + 2, :]
    h1 = jnp.maximum(jnp.dot(h, w1, preferred_element_type=jnp.float32) + b1, 0.0)
    out_ref[...] = (jnp.dot(h1, w2, preferred_element_type=jnp.float32)
                    + b2).astype(out_ref.dtype)


def prepare_params(params):
    """One-time packing of PyTorch-layout weights into kernel layout (call once, not per step)."""
    w_ih, w_hh = params["w_ih"], params["w_hh"]
    b_all = params["b_ih"] + params["b_hh"]
    w1, b1, w2, b2 = params["w1"], params["b1"], params["w2"], params["b2"]
    out_size = int(w2.shape[0])

    # PyTorch gate order i,f,g,o (64 each) -> columns 0:64 / 64:128 / 128:192 / 192:256,
    # i.e. exactly the [i|f][g|o] two-gates-per-lane-group layout the kernel wants.
    wih_p = jnp.asarray(w_ih, jnp.float32).T                      # (D_in, 256)
    b_p = jnp.asarray(b_all, jnp.float32).reshape(1, G4)          # (1, 256)
    whh_p = jnp.zeros((HP, G4), jnp.float32).at[:H, :].set(
        jnp.asarray(w_hh, jnp.float32).T)                         # (128, 256), rows 64: zero
    head_p = (jnp.zeros((2 * HP + 2, F1P), jnp.float32)
              .at[0:H, 0:F1].set(jnp.asarray(w1, jnp.float32).T)          # fc1 weight
              .at[HP:HP + F1, 0:out_size].set(jnp.asarray(w2, jnp.float32).T)  # fc2 weight
              .at[2 * HP, 0:F1].set(jnp.asarray(b1, jnp.float32))
              .at[2 * HP + 1, 0:out_size].set(jnp.asarray(b2, jnp.float32)))
    packed = {"wih": wih_p, "b": b_p, "whh": whh_p, "head": head_p}
    return packed, out_size


@functools.partial(jax.jit, static_argnums=(2,))
def pytorch_model_forward(x, packed, out_size=1):
    """x: (B, T, input_size) float32, packed: prepare_params() output -> (B, out_size)."""
    B, T, D_in = x.shape
    # Time-major, flattened, so the input projection is a single big matmul inside the kernel.
    x_flat = jnp.transpose(x, (1, 0, 2)).reshape(T * B, D_in)

    vmem = pl.BlockSpec(memory_space=pltpu.MemorySpace.VMEM)   # whole array, single fetch
    out = pl.pallas_call(
        functools.partial(lstm_head_kernel, num_steps=T, batch=B),
        out_shape=jax.ShapeDtypeStruct((B, OUTP), jnp.float32),
        in_specs=[vmem] * 5,
        out_specs=vmem,
        scratch_shapes=[pltpu.VMEM((T * B, G4), jnp.float32)],   # gx parking buffer
    )(x_flat, packed["wih"], packed["b"], packed["whh"], packed["head"])
    return out[:, :out_size]


def init_params(key, input_size=60, hidden_size=64, output_size=1):
    """Deterministic parameter init mimicking PyTorch's U(-1/sqrt(fan_in), 1/sqrt(fan_in))."""
    ks = jax.random.split(key, 8)
    k = 1.0 / jnp.sqrt(hidden_size)
    u = lambda kk, shape, bound: jax.random.uniform(kk, shape, jnp.float32, -bound, bound)
    k1 = 1.0 / jnp.sqrt(hidden_size)   # fc1 fan_in = hidden_size
    k2 = 1.0 / jnp.sqrt(25.0)          # fc2 fan_in = 25
    return {
        "w_ih": u(ks[0], (4 * hidden_size, input_size), k),
        "w_hh": u(ks[1], (4 * hidden_size, hidden_size), k),
        "b_ih": u(ks[2], (4 * hidden_size,), k),
        "b_hh": u(ks[3], (4 * hidden_size,), k),
        "w1":   u(ks[4], (25, hidden_size), k1),
        "b1":   u(ks[5], (25,), k1),
        "w2":   u(ks[6], (output_size, 25), k2),
        "b2":   u(ks[7], (output_size,), k2),
    }


def reference_forward(x, params):
    """Pure-JAX reference (lax.scan LSTM) for correctness checking."""
    w_ih, w_hh = params["w_ih"], params["w_hh"]
    b = params["b_ih"] + params["b_hh"]
    Hh = w_hh.shape[1]

    def step(carry, x_t):
        h, c = carry
        gates = x_t @ w_ih.T + h @ w_hh.T + b
        i = jax.nn.sigmoid(gates[:, 0 * Hh:1 * Hh])
        f = jax.nn.sigmoid(gates[:, 1 * Hh:2 * Hh])
        g = jnp.tanh(gates[:, 2 * Hh:3 * Hh])
        o = jax.nn.sigmoid(gates[:, 3 * Hh:4 * Hh])
        c = f * c + i * g
        h = o * jnp.tanh(c)
        return (h, c), None

    B = x.shape[0]
    h0 = jnp.zeros((B, Hh), jnp.float32)
    (h, _), _ = jax.lax.scan(step, (h0, h0), jnp.transpose(x, (1, 0, 2)))
    # dropout in eval mode is identity
    h1 = jnp.maximum(h @ params["w1"].T + params["b1"], 0.0)
    return h1 @ params["w2"].T + params["b2"]


if __name__ == "__main__":
    B, T, D_in, OUT = 8, 8, 60, 1
    key = jax.random.PRNGKey(0)
    kx, kp = jax.random.split(key)
    x = jax.random.normal(kx, (B, T, D_in), jnp.float32)
    params = init_params(kp, D_in, H, OUT)

    packed, out_size = prepare_params(params)   # one-time packing, outside the hot path
    out = pytorch_model_forward(x, packed, out_size)
    jax.block_until_ready(out)

    ref = reference_forward(x, params)
    assert out.shape == (B, OUT)
    assert jnp.allclose(out, ref, atol=1e-4, rtol=1e-4), "mismatch vs reference"
    print("KERNEL_OK")
</pallas_src>

<mosaic_0001>
module attributes {stable_mosaic.version = 11 : i64} {
  func.func @lstm_head_kernel(%arg0: memref<64x60xf32, #tpu.memory_space<vmem>>, %arg1: memref<60x256xf32, #tpu.memory_space<vmem>>, %arg2: memref<1x256xf32, #tpu.memory_space<vmem>>, %arg3: memref<128x256xf32, #tpu.memory_space<vmem>>, %arg4: memref<258x128xf32, #tpu.memory_space<vmem>>, %arg5: memref<8x128xf32, #tpu.memory_space<vmem>>, %arg6: memref<64x256xf32, #tpu.memory_space<vmem>>) attributes {dimension_semantics = [], scalar_prefetch = 0 : i64, scratch_operands = 1 : i64, tpu.core_type = #tpu.core_type<tc>} {
    %c0 = arith.constant 0 : index
    %c0_0 = arith.constant 0 : index
    %0 = vector.load %arg0[%c0, %c0_0] : memref<64x60xf32, #tpu.memory_space<vmem>>, vector<64x60xf32>
    %c0_1 = arith.constant 0 : index
    %c0_2 = arith.constant 0 : index
    %1 = vector.load %arg1[%c0_1, %c0_2] : memref<60x256xf32, #tpu.memory_space<vmem>>, vector<60x256xf32>
    %cst = arith.constant dense<0.000000e+00> : vector<64x256xf32>
    %2 = tpu.matmul %0, %1, %cst {dimension_numbers = #tpu.dot_dimension_numbers<[1], [0], [0], [1], [0, 0, 1, 1], [], []>} : vector<64x60xf32>, vector<60x256xf32>, vector<64x256xf32> -> vector<64x256xf32>
    %c0_3 = arith.constant 0 : index
    %c0_4 = arith.constant 0 : index
    %3 = vector.load %arg2[%c0_3, %c0_4] : memref<1x256xf32, #tpu.memory_space<vmem>>, vector<1x256xf32>
    %4 = vector.broadcast %3 : vector<1x256xf32> to vector<64x256xf32>
    %5 = arith.addf %2, %4 : vector<64x256xf32>
    %c0_5 = arith.constant 0 : index
    %c0_6 = arith.constant 0 : index
    %6 = vector.load %arg6[%c0_5, %c0_6] : memref<64x256xf32, #tpu.memory_space<vmem>>, vector<64x256xf32>
    tpu.vector_store %arg6[%c0_5, %c0_6], %5 {strides = array<i32>} : memref<64x256xf32, #tpu.memory_space<vmem>>, vector<64x256xf32>,
    %7 = tpu.iota {dimensions = array<i32: 1>} : vector<8x128xi32>
    %c64_i32 = arith.constant 64 : i32
    %8 = vector.broadcast %c64_i32 : i32 to vector<8x128xi32>
    %9 = arith.cmpi slt, %7, %8 : vector<8x128xi32>
    %cst_7 = arith.constant 1.000000e+00 : f32
    %cst_8 = arith.constant 5.000000e-01 : f32
    %10 = vector.broadcast %cst_7 : f32 to vector<8x128xf32>
    %11 = vector.broadcast %cst_8 : f32 to vector<8x128xf32>
    %12 = arith.select %9, %10, %11 : vector<8x128xi1>, vector<8x128xf32>
    %cst_9 = arith.constant 0.000000e+00 : f32
    %cst_10 = arith.constant 5.000000e-01 : f32
    %13 = vector.broadcast %cst_9 : f32 to vector<8x128xf32>
    %14 = vector.broadcast %cst_10 : f32 to vector<8x128xf32>
    %15 = arith.select %9, %13, %14 : vector<8x128xi1>, vector<8x128xf32>
    %cst_11 = arith.constant 0.000000e+00 : f32
    %16 = vector.broadcast %cst_11 : f32 to vector<8x128xf32>
    %cst_12 = arith.constant 0.000000e+00 : f32
    %17 = vector.broadcast %cst_12 : f32 to vector<8x128xf32>
    %c0_13 = arith.constant 0 : index
    %c0_14 = arith.constant 0 : index
    %18 = vector.load %arg6[%c0_13, %c0_14] : memref<64x256xf32, #tpu.memory_space<vmem>>, vector<8x256xf32>
    %c0_15 = arith.constant 0 : index
    %c0_16 = arith.constant 0 : index
    %19 = vector.load %arg3[%c0_15, %c0_16] : memref<128x256xf32, #tpu.memory_space<vmem>>, vector<128x256xf32>
    %cst_17 = arith.constant dense<0.000000e+00> : vector<8x256xf32>
    %20 = tpu.matmul %16, %19, %cst_17 {dimension_numbers = #tpu.dot_dimension_numbers<[1], [0], [0], [1], [0, 0, 1, 1], [], []>} : vector<8x128xf32>, vector<128x256xf32>, vector<8x256xf32> -> vector<8x256xf32>
    %21 = arith.addf %18, %20 : vector<8x256xf32>
    %22 = vector.extract_strided_slice %21 {offsets = [0, 0], sizes = [8, 128], strides = [1, 1]} : vector<8x256xf32> to vector<8x128xf32>
    %23 = vector.extract_strided_slice %21 {offsets = [0, 128], sizes = [8, 128], strides = [1, 1]} : vector<8x256xf32> to vector<8x128xf32>
    %cst_18 = arith.constant 5.000000e-01 : f32
    %24 = vector.broadcast %cst_18 : f32 to vector<8x128xf32>
    %25 = arith.mulf %22, %24 : vector<8x128xf32>
    %26 = math.tanh %25 : vector<8x128xf32>
    %cst_19 = arith.constant 5.000000e-01 : f32
    %27 = vector.broadcast %cst_19 : f32 to vector<8x128xf32>
    %28 = arith.mulf %26, %27 : vector<8x128xf32>
    %cst_20 = arith.constant 5.000000e-01 : f32
    %29 = vector.broadcast %cst_20 : f32 to vector<8x128xf32>
    %30 = arith.addf %28, %29 : vector<8x128xf32>
    %31 = arith.mulf %23, %12 : vector<8x128xf32>
    %32 = math.tanh %31 : vector<8x128xf32>
    %33 = arith.mulf %32, %12 : vector<8x128xf32>
    %34 = arith.addf %33, %15 : vector<8x128xf32>
    %c64_i32_21 = arith.constant 64 : i32
    %35 = tpu.dynamic_rotate %30 by %c64_i32_21 dim 1 : vector<8x128xf32>, i32 -> vector<8x128xf32>
    %c64_i32_22 = arith.constant 64 : i32
    %36 = tpu.dynamic_rotate %34 by %c64_i32_22 dim 1 : vector<8x128xf32>, i32 -> vector<8x128xf32>
    %37 = arith.mulf %35, %17 : vector<8x128xf32>
    %38 = arith.mulf %30, %34 : vector<8x128xf32>
    %39 = arith.addf %37, %38 : vector<8x128xf32>
    %40 = math.tanh %39 : vector<8x128xf32>
    %41 = arith.mulf %36, %40 : vector<8x128xf32>
    %c8 = arith.constant 8 : index
    %c0_23 = arith.constant 0 : index
    %42 = vector.load %arg6[%c8, %c0_23] : memref<64x256xf32, #tpu.memory_space<vmem>>, vector<8x256xf32>
    %c0_24 = arith.constant 0 : index
    %c0_25 = arith.constant 0 : index
    %43 = vector.load %arg3[%c0_24, %c0_25] : memref<128x256xf32, #tpu.memory_space<vmem>>, vector<128x256xf32>
    %cst_26 = arith.constant dense<0.000000e+00> : vector<8x256xf32>
    %44 = tpu.matmul %41, %43, %cst_26 {dimension_numbers = #tpu.dot_dimension_numbers<[1], [0], [0], [1], [0, 0, 1, 1], [], []>} : vector<8x128xf32>, vector<128x256xf32>, vector<8x256xf32> -> vector<8x256xf32>
    %45 = arith.addf %42, %44 : vector<8x256xf32>
    %46 = vector.extract_strided_slice %45 {offsets = [0, 0], sizes = [8, 128], strides = [1, 1]} : vector<8x256xf32> to vector<8x128xf32>
    %47 = vector.extract_strided_slice %45 {offsets = [0, 128], sizes = [8, 128], strides = [1, 1]} : vector<8x256xf32> to vector<8x128xf32>
    %cst_27 = arith.constant 5.000000e-01 : f32
    %48 = vector.broadcast %cst_27 : f32 to vector<8x128xf32>
    %49 = arith.mulf %46, %48 : vector<8x128xf32>
    %50 = math.tanh %49 : vector<8x128xf32>
    %cst_28 = arith.constant 5.000000e-01 : f32
    %51 = vector.broadcast %cst_28 : f32 to vector<8x128xf32>
    %52 = arith.mulf %50, %51 : vector<8x128xf32>
    %cst_29 = arith.constant 5.000000e-01 : f32
    %53 = vector.broadcast %cst_29 : f32 to vector<8x128xf32>
    %54 = arith.addf %52, %53 : vector<8x128xf32>
    %55 = arith.mulf %47, %12 : vector<8x128xf32>
    %56 = math.tanh %55 : vector<8x128xf32>
    %57 = arith.mulf %56, %12 : vector<8x128xf32>
    %58 = arith.addf %57, %15 : vector<8x128xf32>
    %c64_i32_30 = arith.constant 64 : i32
    %59 = tpu.dynamic_rotate %54 by %c64_i32_30 dim 1 : vector<8x128xf32>, i32 -> vector<8x128xf32>
    %c64_i32_31 = arith.constant 64 : i32
    %60 = tpu.dynamic_rotate %58 by %c64_i32_31 dim 1 : vector<8x128xf32>, i32 -> vector<8x128xf32>
    %61 = arith.mulf %59, %39 : vector<8x128xf32>
    %62 = arith.mulf %54, %58 : vector<8x128xf32>
    %63 = arith.addf %61, %62 : vector<8x128xf32>
    %64 = math.tanh %63 : vector<8x128xf32>
    %65 = arith.mulf %60, %64 : vector<8x128xf32>
    %c16 = arith.constant 16 : index
    %c0_32 = arith.constant 0 : index
    %66 = vector.load %arg6[%c16, %c0_32] : memref<64x256xf32, #tpu.memory_space<vmem>>, vector<8x256xf32>
    %c0_33 = arith.constant 0 : index
    %c0_34 = arith.constant 0 : index
    %67 = vector.load %arg3[%c0_33, %c0_34] : memref<128x256xf32, #tpu.memory_space<vmem>>, vector<128x256xf32>
    %cst_35 = arith.constant dense<0.000000e+00> : vector<8x256xf32>
    %68 = tpu.matmul %65, %67, %cst_35 {dimension_numbers = #tpu.dot_dimension_numbers<[1], [0], [0], [1], [0, 0, 1, 1], [], []>} : vector<8x128xf32>, vector<128x256xf32>, vector<8x256xf32> -> vector<8x256xf32>
    %69 = arith.addf %66, %68 : vector<8x256xf32>
    %70 = vector.extract_strided_slice %69 {offsets = [0, 0], sizes = [8, 128], strides = [1, 1]} : vector<8x256xf32> to vector<8x128xf32>
    %71 = vector.extract_strided_slice %69 {offsets = [0, 128], sizes = [8, 128], strides = [1, 1]} : vector<8x256xf32> to vector<8x128xf32>
    %cst_36 = arith.constant 5.000000e-01 : f32
    %72 = vector.broadcast %cst_36 : f32 to vector<8x128xf32>
    %73 = arith.mulf %70, %72 : vector<8x128xf32>
    %74 = math.tanh %73 : vector<8x128xf32>
    %cst_37 = arith.constant 5.000000e-01 : f32
    %75 = vector.broadcast %cst_37 : f32 to vector<8x128xf32>
    %76 = arith.mulf %74, %75 : vector<8x128xf32>
    %cst_38 = arith.constant 5.000000e-01 : f32
    %77 = vector.broadcast %cst_38 : f32 to vector<8x128xf32>
    %78 = arith.addf %76, %77 : vector<8x128xf32>
    %79 = arith.mulf %71, %12 : vector<8x128xf32>
    %80 = math.tanh %79 : vector<8x128xf32>
    %81 = arith.mulf %80, %12 : vector<8x128xf32>
    %82 = arith.addf %81, %15 : vector<8x128xf32>
    %c64_i32_39 = arith.constant 64 : i32
    %83 = tpu.dynamic_rotate %78 by %c64_i32_39 dim 1 : vector<8x128xf32>, i32 -> vector<8x128xf32>
    %c64_i32_40 = arith.constant 64 : i32
    %84 = tpu.dynamic_rotate %82 by %c64_i32_40 dim 1 : vector<8x128xf32>, i32 -> vector<8x128xf32>
    %85 = arith.mulf %83, %63 : vector<8x128xf32>
    %86 = arith.mulf %78, %82 : vector<8x128xf32>
    %87 = arith.addf %85, %86 : vector<8x128xf32>
    %88 = math.tanh %87 : vector<8x128xf32>
    %89 = arith.mulf %84, %88 : vector<8x128xf32>
    %c24 = arith.constant 24 : index
    %c0_41 = arith.constant 0 : index
    %90 = vector.load %arg6[%c24, %c0_41] : memref<64x256xf32, #tpu.memory_space<vmem>>, vector<8x256xf32>
    %c0_42 = arith.constant 0 : index
    %c0_43 = arith.constant 0 : index
    %91 = vector.load %arg3[%c0_42, %c0_43] : memref<128x256xf32, #tpu.memory_space<vmem>>, vector<128x256xf32>
    %cst_44 = arith.constant dense<0.000000e+00> : vector<8x256xf32>
    %92 = tpu.matmul %89, %91, %cst_44 {dimension_numbers = #tpu.dot_dimension_numbers<[1], [0], [0], [1], [0, 0, 1, 1], [], []>} : vector<8x128xf32>, vector<128x256xf32>, vector<8x256xf32> -> vector<8x256xf32>
    %93 = arith.addf %90, %92 : vector<8x256xf32>
    %94 = vector.extract_strided_slice %93 {offsets = [0, 0], sizes = [8, 128], strides = [1, 1]} : vector<8x256xf32> to vector<8x128xf32>
    %95 = vector.extract_strided_slice %93 {offsets = [0, 128], sizes = [8, 128], strides = [1, 1]} : vector<8x256xf32> to vector<8x128xf32>
    %cst_45 = arith.constant 5.000000e-01 : f32
    %96 = vector.broadcast %cst_45 : f32 to vector<8x128xf32>
    %97 = arith.mulf %94, %96 : vector<8x128xf32>
    %98 = math.tanh %97 : vector<8x128xf32>
    %cst_46 = arith.constant 5.000000e-01 : f32
    %99 = vector.broadcast %cst_46 : f32 to vector<8x128xf32>
    %100 = arith.mulf %98, %99 : vector<8x128xf32>
    %cst_47 = arith.constant 5.000000e-01 : f32
    %101 = vector.broadcast %cst_47 : f32 to vector<8x128xf32>
    %102 = arith.addf %100, %101 : vector<8x128xf32>
    %103 = arith.mulf %95, %12 : vector<8x128xf32>
    %104 = math.tanh %103 : vector<8x128xf32>
    %105 = arith.mulf %104, %12 : vector<8x128xf32>
    %106 = arith.addf %105, %15 : vector<8x128xf32>
    %c64_i32_48 = arith.constant 64 : i32
    %107 = tpu.dynamic_rotate %102 by %c64_i32_48 dim 1 : vector<8x128xf32>, i32 -> vector<8x128xf32>
    %c64_i32_49 = arith.constant 64 : i32
    %108 = tpu.dynamic_rotate %106 by %c64_i32_49 dim 1 : vector<8x128xf32>, i32 -> vector<8x128xf32>
    %109 = arith.mulf %107, %87 : vector<8x128xf32>
    %110 = arith.mulf %102, %106 : vector<8x128xf32>
    %111 = arith.addf %109, %110 : vector<8x128xf32>
    %112 = math.tanh %111 : vector<8x128xf32>
    %113 = arith.mulf %108, %112 : vector<8x128xf32>
    %c32 = arith.constant 32 : index
    %c0_50 = arith.constant 0 : index
    %114 = vector.load %arg6[%c32, %c0_50] : memref<64x256xf32, #tpu.memory_space<vmem>>, vector<8x256xf32>
    %c0_51 = arith.constant 0 : index
    %c0_52 = arith.constant 0 : index
    %115 = vector.load %arg3[%c0_51, %c0_52] : memref<128x256xf32, #tpu.memory_space<vmem>>, vector<128x256xf32>
    %cst_53 = arith.constant dense<0.000000e+00> : vector<8x256xf32>
    %116 = tpu.matmul %113, %115, %cst_53 {dimension_numbers = #tpu.dot_dimension_numbers<[1], [0], [0], [1], [0, 0, 1, 1], [], []>} : vector<8x128xf32>, vector<128x256xf32>, vector<8x256xf32> -> vector<8x256xf32>
    %117 = arith.addf %114, %116 : vector<8x256xf32>
    %118 = vector.extract_strided_slice %117 {offsets = [0, 0], sizes = [8, 128], strides = [1, 1]} : vector<8x256xf32> to vector<8x128xf32>
    %119 = vector.extract_strided_slice %117 {offsets = [0, 128], sizes = [8, 128], strides = [1, 1]} : vector<8x256xf32> to vector<8x128xf32>
    %cst_54 = arith.constant 5.000000e-01 : f32
    %120 = vector.broadcast %cst_54 : f32 to vector<8x128xf32>
    %121 = arith.mulf %118, %120 : vector<8x128xf32>
    %122 = math.tanh %121 : vector<8x128xf32>
    %cst_55 = arith.constant 5.000000e-01 : f32
    %123 = vector.broadcast %cst_55 : f32 to vector<8x128xf32>
    %124 = arith.mulf %122, %123 : vector<8x128xf32>
    %cst_56 = arith.constant 5.000000e-01 : f32
    %125 = vector.broadcast %cst_56 : f32 to vector<8x128xf32>
    %126 = arith.addf %124, %125 : vector<8x128xf32>
    %127 = arith.mulf %119, %12 : vector<8x128xf32>
    %128 = math.tanh %127 : vector<8x128xf32>
    %129 = arith.mulf %128, %12 : vector<8x128xf32>
    %130 = arith.addf %129, %15 : vector<8x128xf32>
    %c64_i32_57 = arith.constant 64 : i32
    %131 = tpu.dynamic_rotate %126 by %c64_i32_57 dim 1 : vector<8x128xf32>, i32 -> vector<8x128xf32>
    %c64_i32_58 = arith.constant 64 : i32
    %132 = tpu.dynamic_rotate %130 by %c64_i32_58 dim 1 : vector<8x128xf32>, i32 -> vector<8x128xf32>
    %133 = arith.mulf %131, %111 : vector<8x128xf32>
    %134 = arith.mulf %126, %130 : vector<8x128xf32>
    %135 = arith.addf %133, %134 : vector<8x128xf32>
    %136 = math.tanh %135 : vector<8x128xf32>
    %137 = arith.mulf %132, %136 : vector<8x128xf32>
    %c40 = arith.constant 40 : index
    %c0_59 = arith.constant 0 : index
    %138 = vector.load %arg6[%c40, %c0_59] : memref<64x256xf32, #tpu.memory_space<vmem>>, vector<8x256xf32>
    %c0_60 = arith.constant 0 : index
    %c0_61 = arith.constant 0 : index
    %139 = vector.load %arg3[%c0_60, %c0_61] : memref<128x256xf32, #tpu.memory_space<vmem>>, vector<128x256xf32>
    %cst_62 = arith.constant dense<0.000000e+00> : vector<8x256xf32>
    %140 = tpu.matmul %137, %139, %cst_62 {dimension_numbers = #tpu.dot_dimension_numbers<[1], [0], [0], [1], [0, 0, 1, 1], [], []>} : vector<8x128xf32>, vector<128x256xf32>, vector<8x256xf32> -> vector<8x256xf32>
    %141 = arith.addf %138, %140 : vector<8x256xf32>
    %142 = vector.extract_strided_slice %141 {offsets = [0, 0], sizes = [8, 128], strides = [1, 1]} : vector<8x256xf32> to vector<8x128xf32>
    %143 = vector.extract_strided_slice %141 {offsets = [0, 128], sizes = [8, 128], strides = [1, 1]} : vector<8x256xf32> to vector<8x128xf32>
    %cst_63 = arith.constant 5.000000e-01 : f32
    %144 = vector.broadcast %cst_63 : f32 to vector<8x128xf32>
    %145 = arith.mulf %142, %144 : vector<8x128xf32>
    %146 = math.tanh %145 : vector<8x128xf32>
    %cst_64 = arith.constant 5.000000e-01 : f32
    %147 = vector.broadcast %cst_64 : f32 to vector<8x128xf32>
    %148 = arith.mulf %146, %147 : vector<8x128xf32>
    %cst_65 = arith.constant 5.000000e-01 : f32
    %149 = vector.broadcast %cst_65 : f32 to vector<8x128xf32>
    %150 = arith.addf %148, %149 : vector<8x128xf32>
    %151 = arith.mulf %143, %12 : vector<8x128xf32>
    %152 = math.tanh %151 : vector<8x128xf32>
    %153 = arith.mulf %152, %12 : vector<8x128xf32>
    %154 = arith.addf %153, %15 : vector<8x128xf32>
    %c64_i32_66 = arith.constant 64 : i32
    %155 = tpu.dynamic_rotate %150 by %c64_i32_66 dim 1 : vector<8x128xf32>, i32 -> vector<8x128xf32>
    %c64_i32_67 = arith.constant 64 : i32
    %156 = tpu.dynamic_rotate %154 by %c64_i32_67 dim 1 : vector<8x128xf32>, i32 -> vector<8x128xf32>
    %157 = arith.mulf %155, %135 : vector<8x128xf32>
    %158 = arith.mulf %150, %154 : vector<8x128xf32>
    %159 = arith.addf %157, %158 : vector<8x128xf32>
    %160 = math.tanh %159 : vector<8x128xf32>
    %161 = arith.mulf %156, %160 : vector<8x128xf32>
    %c48 = arith.constant 48 : index
    %c0_68 = arith.constant 0 : index
    %162 = vector.load %arg6[%c48, %c0_68] : memref<64x256xf32, #tpu.memory_space<vmem>>, vector<8x256xf32>
    %c0_69 = arith.constant 0 : index
    %c0_70 = arith.constant 0 : index
    %163 = vector.load %arg3[%c0_69, %c0_70] : memref<128x256xf32, #tpu.memory_space<vmem>>, vector<128x256xf32>
    %cst_71 = arith.constant dense<0.000000e+00> : vector<8x256xf32>
    %164 = tpu.matmul %161, %163, %cst_71 {dimension_numbers = #tpu.dot_dimension_numbers<[1], [0], [0], [1], [0, 0, 1, 1], [], []>} : vector<8x128xf32>, vector<128x256xf32>, vector<8x256xf32> -> vector<8x256xf32>
    %165 = arith.addf %162, %164 : vector<8x256xf32>
    %166 = vector.extract_strided_slice %165 {offsets = [0, 0], sizes = [8, 128], strides = [1, 1]} : vector<8x256xf32> to vector<8x128xf32>
    %167 = vector.extract_strided_slice %165 {offsets = [0, 128], sizes = [8, 128], strides = [1, 1]} : vector<8x256xf32> to vector<8x128xf32>
    %cst_72 = arith.constant 5.000000e-01 : f32
    %168 = vector.broadcast %cst_72 : f32 to vector<8x128xf32>
    %169 = arith.mulf %166, %168 : vector<8x128xf32>
    %170 = math.tanh %169 : vector<8x128xf32>
    %cst_73 = arith.constant 5.000000e-01 : f32
    %171 = vector.broadcast %cst_73 : f32 to vector<8x128xf32>
    %172 = arith.mulf %170, %171 : vector<8x128xf32>
    %cst_74 = arith.constant 5.000000e-01 : f32
    %173 = vector.broadcast %cst_74 : f32 to vector<8x128xf32>
    %174 = arith.addf %172, %173 : vector<8x128xf32>
    %175 = arith.mulf %167, %12 : vector<8x128xf32>
    %176 = math.tanh %175 : vector<8x128xf32>
    %177 = arith.mulf %176, %12 : vector<8x128xf32>
    %178 = arith.addf %177, %15 : vector<8x128xf32>
    %c64_i32_75 = arith.constant 64 : i32
    %179 = tpu.dynamic_rotate %174 by %c64_i32_75 dim 1 : vector<8x128xf32>, i32 -> vector<8x128xf32>
    %c64_i32_76 = arith.constant 64 : i32
    %180 = tpu.dynamic_rotate %178 by %c64_i32_76 dim 1 : vector<8x128xf32>, i32 -> vector<8x128xf32>
    %181 = arith.mulf %179, %159 : vector<8x128xf32>
    %182 = arith.mulf %174, %178 : vector<8x128xf32>
    %183 = arith.addf %181, %182 : vector<8x128xf32>
    %184 = math.tanh %183 : vector<8x128xf32>
    %185 = arith.mulf %180, %184 : vector<8x128xf32>
    %c56 = arith.constant 56 : index
    %c0_77 = arith.constant 0 : index
    %186 = vector.load %arg6[%c56, %c0_77] : memref<64x256xf32, #tpu.memory_space<vmem>>, vector<8x256xf32>
    %c0_78 = arith.constant 0 : index
    %c0_79 = arith.constant 0 : index
    %187 = vector.load %arg3[%c0_78, %c0_79] : memref<128x256xf32, #tpu.memory_space<vmem>>, vector<128x256xf32>
    %cst_80 = arith.constant dense<0.000000e+00> : vector<8x256xf32>
    %188 = tpu.matmul %185, %187, %cst_80 {dimension_numbers = #tpu.dot_dimension_numbers<[1], [0], [0], [1], [0, 0, 1, 1], [], []>} : vector<8x128xf32>, vector<128x256xf32>, vector<8x256xf32> -> vector<8x256xf32>
    %189 = arith.addf %186, %188 : vector<8x256xf32>
    %190 = vector.extract_strided_slice %189 {offsets = [0, 0], sizes = [8, 128], strides = [1, 1]} : vector<8x256xf32> to vector<8x128xf32>
    %191 = vector.extract_strided_slice %189 {offsets = [0, 128], sizes = [8, 128], strides = [1, 1]} : vector<8x256xf32> to vector<8x128xf32>
    %cst_81 = arith.constant 5.000000e-01 : f32
    %192 = vector.broadcast %cst_81 : f32 to vector<8x128xf32>
    %193 = arith.mulf %190, %192 : vector<8x128xf32>
    %194 = math.tanh %193 : vector<8x128xf32>
    %cst_82 = arith.constant 5.000000e-01 : f32
    %195 = vector.broadcast %cst_82 : f32 to vector<8x128xf32>
    %196 = arith.mulf %194, %195 : vector<8x128xf32>
    %cst_83 = arith.constant 5.000000e-01 : f32
    %197 = vector.broadcast %cst_83 : f32 to vector<8x128xf32>
    %198 = arith.addf %196, %197 : vector<8x128xf32>
    %199 = arith.mulf %191, %12 : vector<8x128xf32>
    %200 = math.tanh %199 : vector<8x128xf32>
    %201 = arith.mulf %200, %12 : vector<8x128xf32>
    %202 = arith.addf %201, %15 : vector<8x128xf32>
    %c64_i32_84 = arith.constant 64 : i32
    %203 = tpu.dynamic_rotate %198 by %c64_i32_84 dim 1 : vector<8x128xf32>, i32 -> vector<8x128xf32>
    %c64_i32_85 = arith.constant 64 : i32
    %204 = tpu.dynamic_rotate %202 by %c64_i32_85 dim 1 : vector<8x128xf32>, i32 -> vector<8x128xf32>
    %205 = arith.mulf %203, %183 : vector<8x128xf32>
    %206 = arith.mulf %198, %202 : vector<8x128xf32>
    %207 = arith.addf %205, %206 : vector<8x128xf32>
    %208 = math.tanh %207 : vector<8x128xf32>
    %209 = arith.mulf %204, %208 : vector<8x128xf32>
    %c0_86 = arith.constant 0 : index
    %c0_87 = arith.constant 0 : index
    %210 = vector.load %arg4[%c0_86, %c0_87] : memref<258x128xf32, #tpu.memory_space<vmem>>, vector<128x128xf32>
    %c128 = arith.constant 128 : index
    %c0_88 = arith.constant 0 : index
    %211 = vector.load %arg4[%c128, %c0_88] : memref<258x128xf32, #tpu.memory_space<vmem>>, vector<128x128xf32>
    %c256 = arith.constant 256 : index
    %c0_89 = arith.constant 0 : index
    %212 = vector.load %arg4[%c256, %c0_89] : memref<258x128xf32, #tpu.memory_space<vmem>>, vector<1x128xf32>
    %c257 = arith.constant 257 : index
    %c0_90 = arith.constant 0 : index
    %213 = vector.load %arg4[%c257, %c0_90] : memref<258x128xf32, #tpu.memory_space<vmem>>, vector<1x128xf32>
    %cst_91 = arith.constant dense<0.000000e+00> : vector<8x128xf32>
    %214 = tpu.matmul %209, %210, %cst_91 {dimension_numbers = #tpu.dot_dimension_numbers<[1], [0], [0], [1], [0, 0, 1, 1], [], []>} : vector<8x128xf32>, vector<128x128xf32>, vector<8x128xf32> -> vector<8x128xf32>
    %215 = vector.broadcast %212 : vector<1x128xf32> to vector<8x128xf32>
    %216 = arith.addf %214, %215 : vector<8x128xf32>
    %cst_92 = arith.constant 0.000000e+00 : f32
    %217 = vector.broadcast %cst_92 : f32 to vector<8x128xf32>
    %218 = arith.maximumf %216, %217 : vector<8x128xf32>
    %cst_93 = arith.constant dense<0.000000e+00> : vector<8x128xf32>
    %219 = tpu.matmul %218, %211, %cst_93 {dimension_numbers = #tpu.dot_dimension_numbers<[1], [0], [0], [1], [0, 0, 1, 1], [], []>} : vector<8x128xf32>, vector<128x128xf32>, vector<8x128xf32> -> vector<8x128xf32>
    %220 = vector.broadcast %213 : vector<1x128xf32> to vector<8x128xf32>
    %221 = arith.addf %219, %220 : vector<8x128xf32>
    %c0_94 = arith.constant 0 : index
    %c0_95 = arith.constant 0 : index
    %222 = vector.load %arg5[%c0_94, %c0_95] : memref<8x128xf32, #tpu.memory_space<vmem>>, vector<8x128xf32>
    tpu.vector_store %arg5[%c0_94, %c0_95], %221 {strides = array<i32>} : memref<8x128xf32, #tpu.memory_space<vmem>>, vector<8x128xf32>,
    return
  }
}

</mosaic_0001>

<bundles_post_ra>
// kernel: pytorch_model_forward.1
= control target key start
LH: loop header
LB: loop body
LE: loop exit
PB: predicated region body
PF: predicated region fallthrough
CT: control target
= control target key end

     0   :  { %10 = vsyncpa [#allocation4], 0  ;;  %s1515_s0 = inlined_call_operand.vmem [shape: f32[64,60], index: 0, kind: input, shape index: {}]   ;;  %s1516_s1 = inlined_call_operand.vmem [shape: f32[60,256], index: 1, kind: input, shape index: {}]   ;;  %s1517_s2 = inlined_call_operand.vmem [shape: f32[1,256], index: 2, kind: input, shape index: {}]   ;;  %s1518_s3 = inlined_call_operand.hbm [shape: f32[128,256], index: 3, kind: input, shape index: {}]   ;;  %s1519_s4 = inlined_call_operand.hbm [shape: f32[258,128], index: 4, kind: input, shape index: {}]   ;;  %s1520_s5 = inlined_call_operand.vmem [shape: f32[8,128], index: 5, kind: output, shape index: {}]  }
   0x1   :  { %s22_s20 = sshll.u32 %s1518_s3, 4  ;;  %s23_s20 = int_to_ptr.hbm [resolvable:$true] %s22_s20 }
   0x2   :  { %11 = vsyncpa [#allocation6], 0  ;;  %s950_s21 = smov [#allocation3]   ;;  %s35_s25 = sshll.u32 %s1519_s4, 4  ;;  %s36_s25 = int_to_ptr.hbm [resolvable:$true] %s35_s25 }
   0x3   :  { %s24_s22 = sshll.u32 %s950_s21, 4  ;;  %s951_s26 = smov 256   ;;  %s25_s22 = int_to_ptr.vmem [resolvable:$true] %s24_s22 }
   0x4   :  { %s952_s27 = smov 16   ;;  %s953_s28 = smov [#allocation5]  }
   0x5   :  { %30 = dma.hbm_to_vmem [thread:$0]  %s23_s20, 4096, %s25_s22, [#allocation4], %s951_s26, %s951_s26, %s952_s27  }
   0x6   :  { %s37_s29 = sshll.u32 %s953_s28, 4  ;;  %s954_s30 = smov 128   ;;  %s38_s29 = int_to_ptr.vmem [resolvable:$true] %s37_s29 }
   0x7   :  { %s955_s6 = smov 8  }
   0x8   :  { %43 = dma.hbm_to_vmem [thread:$0]  %s36_s25, 4224, %s38_s29, [#allocation6], %s954_s30, %s954_s30, %s955_s6  }
   0x9   :  { %946 = dma.done.wait [#allocation4], 4096  }
   0xa   :  { %947 = vsyncadd [#allocation4], 4294963200 }
   0xb   :  { %948 = dma.done.wait [#allocation6], 4224  }
   0xc   :  { %949 = vsyncadd [#allocation6], 4294963072  ;;  %v995_v0 = vld [vmem:[#allocation3 + $0xf0] sm:$0xff]  ;;  %v997_v1 = vld [vmem:[#allocation3 + $0xf8] sm:$0xff]  ;;  %vm107_vm0 = vcmask 1043456   ;;  %vm82_vm1 = vcmask 490496   ;;  %v212_v50 = vlaneseq }
   0xd   :  { %v999_v2 = vld [vmem:[#allocation3 + $0xe0] sm:$0xff]  ;;  %251 = vmatpush.msra.mxu2 %v995_v0  ;;  %271 = vmatpush.msra.mxu3 %v997_v1  ;;  %v1003_v3 = vld [vmem:[#allocation3 + $0xe8] sm:$0xff]  ;;  %v1005_v4 = vld [vmem:[#allocation3 + $0xd0] sm:$0xff]  ;;  %v956_v49 = vmov 0.0   ;;  %v957_v60 = vmov 0.5  }
   0xe   :  { %v1007_v5 = vld [vmem:[#allocation3 + $0xd8] sm:$0xff]  ;;  %v1011_v6 = vld [vmem:[#allocation3 + $0xc0] sm:$0xff]  ;;  %v1013_v7 = vld [vmem:[#allocation3 + $0xc8] sm:$0xff]  ;;  %v213_v54 = vand.u32 127, %v212_v50 }
   0xf   :  { %252 = vmatpush.msra.mxu2 %v999_v2  ;;  %272 = vmatpush.msra.mxu3 %v1003_v3  ;;  %v1017_v8 = vld [vmem:[#allocation3 + $0xb0] sm:$0xff]  ;;  %v1019_v9 = vld [vmem:[#allocation3 + $0xb8] sm:$0xff]  ;;  %v1026_v11 = vld [vmem:[#allocation3 + $0xa0] sm:$0xff] }
  0x10   :  { %v74_v10 = vld [vmem:[%s1516_s1 + $0x70] sm:$0xf]  ;;  %v75_v12 = vld [vmem:[%s1516_s1 + $0x78] sm:$0xf]  ;;  %v1031_v13 = vld [vmem:[#allocation3 + $0xa8] sm:$0xff]  ;;  %vm214_vm2 = vcmp.lt.s32.totalorder %v213_v54, 64 }
  0x11   :  { %253 = vmatpush.msra.mxu2 %v1005_v4  ;;  %273 = vmatpush.msra.mxu3 %v1007_v5  ;;  %v72_v14 = vld [vmem:[%s1516_s1 + $0x60] sm:$0xff]  ;;  %v73_v15 = vld [vmem:[%s1516_s1 + $0x68] sm:$0xff]  ;;  %v70_v16 = vld [vmem:[%s1516_s1 + $0x50] sm:$0xff]  ;;  %v1281_v61 = vsel %vm214_vm2, 1.0, %v957_v60 }
  0x12   :  { %821 = vmatpush.msk.msra.mxu0 %vm107_vm0, %v74_v10  ;;  %830 = vmatpush.msk.msra.mxu1 %vm107_vm0, %v75_v12  ;;  %v71_v17 = vld [vmem:[%s1516_s1 + $0x58] sm:$0xff]  ;;  %v1047_v18 = vld [vmem:[#allocation3 + $0x90] sm:$0xff]  ;;  %v68_v20 = vld [vmem:[%s1516_s1 + $0x40] sm:$0xff] }
  0x13   :  { %254 = vmatpush.msra.mxu2 %v1011_v6  ;;  %274 = vmatpush.msra.mxu3 %v1013_v7  ;;  %v1049_v19 = vld [vmem:[#allocation3 + $0x98] sm:$0xff]  ;;  %v69_v21 = vld [vmem:[%s1516_s1 + $0x48] sm:$0xff]  ;;  %v1059_v22 = vld [vmem:[#allocation3 + $0x80] sm:$0xff] }
  0x14   :  { %123 = vmatpush.msra.mxu0 %v72_v14  ;;  %164 = vmatpush.msra.mxu1 %v73_v15  ;;  %v1061_v23 = vld [vmem:[#allocation3 + $0x88] sm:$0xff]  ;;  %v66_v24 = vld [vmem:[%s1516_s1 + $0x30] sm:$0xff]  ;;  %v67_v25 = vld [vmem:[%s1516_s1 + $0x38] sm:$0xff] }
  0x15   :  { %255 = vmatpush.msra.mxu2 %v1017_v8  ;;  %275 = vmatpush.msra.mxu3 %v1019_v9  ;;  %v1071_v26 = vld [vmem:[#allocation3 + $0x70] sm:$0xff]  ;;  %v1073_v27 = vld [vmem:[#allocation3 + $0x78] sm:$0xff]  ;;  %v64_v28 = vld [vmem:[%s1516_s1 + $0x20] sm:$0xff] }
  0x16   :  { %124 = vmatpush.msra.mxu0 %v70_v16  ;;  %165 = vmatpush.msra.mxu1 %v71_v17  ;;  %v65_v29 = vld [vmem:[%s1516_s1 + $0x28] sm:$0xff]  ;;  %v1083_v30 = vld [vmem:[#allocation3 + $0x60] sm:$0xff]  ;;  %v62_v32 = vld [vmem:[%s1516_s1 + $0x10] sm:$0xff]  ;;  %v1284_v17 = vsel %vm214_vm2, 0.0, %v957_v60 }
  0x17   :  { %256 = vmatpush.msra.mxu2 %v1026_v11  ;;  %276 = vmatpush.msra.mxu3 %v1031_v13  ;;  %v1085_v31 = vld [vmem:[#allocation3 + $0x68] sm:$0xff]  ;;  %v63_v33 = vld [vmem:[%s1516_s1 + $0x18] sm:$0xff]  ;;  %v1095_v34 = vld [vmem:[#allocation3 + $0x50] sm:$0xff] }
  0x18   :  { %125 = vmatpush.msra.mxu0 %v68_v20  ;;  %166 = vmatpush.msra.mxu1 %v69_v21  ;;  %v1097_v35 = vld [vmem:[#allocation3 + $0x58] sm:$0xff]  ;;  %v60_v36 = vld [vmem:[%s1516_s1] sm:$0xff]  ;;  %v61_v37 = vld [vmem:[%s1516_s1 + $0x8] sm:$0xff] }
  0x19   :  { %257 = vmatpush.msra.mxu2 %v1047_v18  ;;  %277 = vmatpush.msra.mxu3 %v1049_v19  ;;  %v1107_v38 = vld [vmem:[#allocation3 + $0x40] sm:$0xff]  ;;  %v1109_v39 = vld [vmem:[#allocation3 + $0x48] sm:$0xff]  ;;  %v1116_v41 = vld [vmem:[#allocation3 + $0x30] sm:$0xff] }
  0x1a   :  { %126 = vmatpush.msra.mxu0 %v66_v24  ;;  %167 = vmatpush.msra.mxu1 %v67_v25  ;;  %v52_v40 = vld [vmem:[%s1515_s0] sm:$0xff]  ;;  %v1118_v42 = vld [vmem:[#allocation3 + $0x38] sm:$0xff]  ;;  %v1124_v44 = vld [vmem:[#allocation3 + $0x28] sm:$0xff] }
  0x1b   :  { %258 = vmatpush.msra.mxu2 %v1059_v22  ;;  %278 = vmatpush.msra.mxu3 %v1061_v23  ;;  %v1122_v43 = vld [vmem:[#allocation3 + $0x20] sm:$0xff]  ;;  %v1130_v45 = vld [vmem:[#allocation3 + $0x10] sm:$0xff]  ;;  %v1132_v46 = vld [vmem:[#allocation3 + $0x18] sm:$0xff] }
  0x1c   :  { %127 = vmatpush.msra.mxu0 %v64_v28  ;;  %168 = vmatpush.msra.mxu1 %v65_v29  ;;  %v1138_v47 = vld [vmem:[#allocation3] sm:$0xff]  ;;  %v1140_v48 = vld [vmem:[#allocation3 + $0x8] sm:$0xff]  ;;  %v54_v50 = vld [vmem:[%s1515_s0 + $0x10] sm:$0xff] }
  0x1d   :  { %259 = vmatpush.msra.mxu2 %v1071_v26  ;;  %279 = vmatpush.msra.mxu3 %v1073_v27  ;;  %v76_v51 = vld [vmem:[%s1517_s2] sm:$0x3]  ;;  %s958_s2 = smov 64   ;;  %v53_v29 = vld [vmem:[%s1515_s0 + $0x8] sm:$0xff] }
  0x1e   :  { %128 = vmatpush.msra.mxu0 %v62_v32  ;;  %169 = vmatpush.msra.mxu1 %v63_v33  ;;  %v1275_v52 = vperm.slane %v76_v51, 0  ;;  %v1277_v53 = vperm.slane %v76_v51, 1 }
  0x1f   :  { %260 = vmatpush.msra.mxu2 %v1083_v30  ;;  %280 = vmatpush.msra.mxu3 %v1085_v31 }
  0x20   :  { %129 = vmatpush.msra.mxu0 %v60_v36  ;;  %170 = vmatpush.msra.mxu1 %v61_v37 }
  0x21   :  { %261 = vmatpush.msra.mxu2 %v1095_v34  ;;  %281 = vmatpush.msra.mxu3 %v1097_v35 }
  0x22   :  { %822 = vmatmul.msk.f32.vlgmr.msra.gmra.mxu0 %vm82_vm1, %v52_v40  ;;  %831 = vmatmul.msk.f32.vlgmr.msra.gmra.mxu1 %vm82_vm1, %v52_v40 }
  0x23   :  { %262 = vmatpush.msra.mxu2 %v1107_v38  ;;  %282 = vmatpush.msra.mxu3 %v1109_v39 }
  0x24   :  { %373 = vmatpush.msrb.mxu0 %v995_v0  ;;  %393 = vmatpush.msrb.mxu1 %v997_v1 }
  0x25   :  { %263 = vmatpush.msra.mxu2 %v1116_v41  ;;  %283 = vmatpush.msra.mxu3 %v1118_v42 }
  0x26   :  { %374 = vmatpush.msrb.mxu0 %v999_v2  ;;  %394 = vmatpush.msrb.mxu1 %v1003_v3 }
  0x27   :  { %264 = vmatpush.msra.mxu2 %v1122_v43  ;;  %284 = vmatpush.msra.mxu3 %v1124_v44 }
  0x28   :  { %375 = vmatpush.msrb.mxu0 %v1005_v4  ;;  %395 = vmatpush.msrb.mxu1 %v1007_v5 }
  0x29   :  { %265 = vmatpush.msra.mxu2 %v1130_v45  ;;  %285 = vmatpush.msra.mxu3 %v1132_v46 }
  0x2a   :  { %376 = vmatpush.msrb.mxu0 %v1011_v6  ;;  %396 = vmatpush.msrb.mxu1 %v1013_v7 }
  0x2b   :  { %266 = vmatpush.msra.mxu2 %v1138_v47  ;;  %286 = vmatpush.msra.mxu3 %v1140_v48 }
  0x2c   :  { %267 = vmatmul.f32.vlgmr.msra.gmra.mxu2 %v956_v49  ;;  %287 = vmatmul.f32.vlgmr.msra.gmra.mxu3 %v956_v49 }
  0x2d   :  { %312 = vmatpush.msrb.mxu2 %v995_v0  ;;  %332 = vmatpush.msrb.mxu3 %v997_v1 }
  0x2e   :  { %377 = vmatpush.msrb.mxu0 %v1017_v8  ;;  %397 = vmatpush.msrb.mxu1 %v1019_v9 }
  0x2f   :  { %313 = vmatpush.msrb.mxu2 %v999_v2  ;;  %333 = vmatpush.msrb.mxu3 %v1003_v3 }
  0x30   :  { %378 = vmatpush.msrb.mxu0 %v1026_v11  ;;  %398 = vmatpush.msrb.mxu1 %v1031_v13 }
  0x31   :  { %314 = vmatpush.msrb.mxu2 %v1005_v4  ;;  %334 = vmatpush.msrb.mxu3 %v1007_v5 }
  0x32   :  { %379 = vmatpush.msrb.mxu0 %v1047_v18  ;;  %399 = vmatpush.msrb.mxu1 %v1049_v19 }
  0x33   :  { %315 = vmatpush.msrb.mxu2 %v1011_v6  ;;  %335 = vmatpush.msrb.mxu3 %v1013_v7 }
  0x34   :  { %380 = vmatpush.msrb.mxu0 %v1059_v22  ;;  %400 = vmatpush.msrb.mxu1 %v1061_v23 }
  0x35   :  { %316 = vmatpush.msrb.mxu2 %v1017_v8  ;;  %336 = vmatpush.msrb.mxu3 %v1019_v9 }
  0x36   :  { %381 = vmatpush.msrb.mxu0 %v1071_v26  ;;  %401 = vmatpush.msrb.mxu1 %v1073_v27 }
  0x37   :  { %317 = vmatpush.msrb.mxu2 %v1026_v11  ;;  %337 = vmatpush.msrb.mxu3 %v1031_v13 }
  0x38   :  { %382 = vmatpush.msrb.mxu0 %v1083_v30  ;;  %402 = vmatpush.msrb.mxu1 %v1085_v31 }
  0x39   :  { %318 = vmatpush.msrb.mxu2 %v1047_v18  ;;  %338 = vmatpush.msrb.mxu3 %v1049_v19 }
  0x3a   :  { %383 = vmatpush.msrb.mxu0 %v1095_v34  ;;  %403 = vmatpush.msrb.mxu1 %v1097_v35 }
  0x3b   :  { %319 = vmatpush.msrb.mxu2 %v1059_v22  ;;  %339 = vmatpush.msrb.mxu3 %v1061_v23 }
  0x3c   :  { %384 = vmatpush.msrb.mxu0 %v1107_v38  ;;  %404 = vmatpush.msrb.mxu1 %v1109_v39 }
  0x3d   :  { %320 = vmatpush.msrb.mxu2 %v1071_v26  ;;  %340 = vmatpush.msrb.mxu3 %v1073_v27 }
  0x3e   :  { %385 = vmatpush.msrb.mxu0 %v1116_v41  ;;  %405 = vmatpush.msrb.mxu1 %v1118_v42 }
  0x3f   :  { %321 = vmatpush.msrb.mxu2 %v1083_v30  ;;  %341 = vmatpush.msrb.mxu3 %v1085_v31 }
  0x40   :  { %386 = vmatpush.msrb.mxu0 %v1122_v43  ;;  %406 = vmatpush.msrb.mxu1 %v1124_v44 }
  0x41   :  { %322 = vmatpush.msrb.mxu2 %v1095_v34  ;;  %342 = vmatpush.msrb.mxu3 %v1097_v35 }
  0x42   :  { %387 = vmatpush.msrb.mxu0 %v1130_v45  ;;  %407 = vmatpush.msrb.mxu1 %v1132_v46 }
  0x43   :  { %323 = vmatpush.msrb.mxu2 %v1107_v38  ;;  %343 = vmatpush.msrb.mxu3 %v1109_v39 }
  0x44   :  { %388 = vmatpush.msrb.mxu0 %v1138_v47  ;;  %408 = vmatpush.msrb.mxu1 %v1140_v48 }
  0x45   :  { %324 = vmatpush.msrb.mxu2 %v1116_v41  ;;  %344 = vmatpush.msrb.mxu3 %v1118_v42 }
  0x46   :  { %495 = vmatpush.msra.mxu0 %v995_v0  ;;  %515 = vmatpush.msra.mxu1 %v997_v1 }
  0x47   :  { %325 = vmatpush.msrb.mxu2 %v1122_v43  ;;  %345 = vmatpush.msrb.mxu3 %v1124_v44 }
  0x48   :  { %496 = vmatpush.msra.mxu0 %v999_v2  ;;  %516 = vmatpush.msra.mxu1 %v1003_v3 }
  0x49   :  { %326 = vmatpush.msrb.mxu2 %v1130_v45  ;;  %346 = vmatpush.msrb.mxu3 %v1132_v46 }
  0x4a   :  { %497 = vmatpush.msra.mxu0 %v1005_v4  ;;  %517 = vmatpush.msra.mxu1 %v1007_v5 }
  0x4b   :  { %327 = vmatpush.msrb.mxu2 %v1138_v47  ;;  %347 = vmatpush.msrb.mxu3 %v1140_v48 }
  0x4c   :  { %498 = vmatpush.msra.mxu0 %v1011_v6  ;;  %518 = vmatpush.msra.mxu1 %v1013_v7 }
  0x4d   :  { %434 = vmatpush.msra.mxu2 %v995_v0  ;;  %454 = vmatpush.msra.mxu3 %v997_v1 }
  0x4e   :  { %499 = vmatpush.msra.mxu0 %v1017_v8  ;;  %519 = vmatpush.msra.mxu1 %v1019_v9 }
  0x4f   :  { %435 = vmatpush.msra.mxu2 %v999_v2  ;;  %455 = vmatpush.msra.mxu3 %v1003_v3 }
  0x50   :  { %500 = vmatpush.msra.mxu0 %v1026_v11  ;;  %520 = vmatpush.msra.mxu1 %v1031_v13 }
  0x51   :  { %436 = vmatpush.msra.mxu2 %v1005_v4  ;;  %456 = vmatpush.msra.mxu3 %v1007_v5 }
  0x52   :  { %501 = vmatpush.msra.mxu0 %v1047_v18  ;;  %521 = vmatpush.msra.mxu1 %v1049_v19 }
  0x53   :  { %437 = vmatpush.msra.mxu2 %v1011_v6  ;;  %457 = vmatpush.msra.mxu3 %v1013_v7 }
  0x54   :  { %502 = vmatpush.msra.mxu0 %v1059_v22  ;;  %522 = vmatpush.msra.mxu1 %v1061_v23 }
  0x55   :  { %438 = vmatpush.msra.mxu2 %v1017_v8  ;;  %458 = vmatpush.msra.mxu3 %v1019_v9 }
  0x56   :  { %503 = vmatpush.msra.mxu0 %v1071_v26  ;;  %523 = vmatpush.msra.mxu1 %v1073_v27 }
  0x57   :  { %439 = vmatpush.msra.mxu2 %v1026_v11  ;;  %459 = vmatpush.msra.mxu3 %v1031_v13 }
  0x58   :  { %504 = vmatpush.msra.mxu0 %v1083_v30  ;;  %524 = vmatpush.msra.mxu1 %v1085_v31 }
  0x59   :  { %440 = vmatpush.msra.mxu2 %v1047_v18  ;;  %460 = vmatpush.msra.mxu3 %v1049_v19 }
  0x5a   :  { %505 = vmatpush.msra.mxu0 %v1095_v34  ;;  %525 = vmatpush.msra.mxu1 %v1097_v35 }
  0x5b   :  { %441 = vmatpush.msra.mxu2 %v1059_v22  ;;  %461 = vmatpush.msra.mxu3 %v1061_v23 }
  0x5c   :  { %506 = vmatpush.msra.mxu0 %v1107_v38  ;;  %526 = vmatpush.msra.mxu1 %v1109_v39 }
  0x5d   :  { %442 = vmatpush.msra.mxu2 %v1071_v26  ;;  %462 = vmatpush.msra.mxu3 %v1073_v27 }
  0x5e   :  { %507 = vmatpush.msra.mxu0 %v1116_v41  ;;  %527 = vmatpush.msra.mxu1 %v1118_v42 }
  0x5f   :  { %443 = vmatpush.msra.mxu2 %v1083_v30  ;;  %463 = vmatpush.msra.mxu3 %v1085_v31 }
  0x60   :  { %508 = vmatpush.msra.mxu0 %v1122_v43  ;;  %528 = vmatpush.msra.mxu1 %v1124_v44 }
  0x61   :  { %444 = vmatpush.msra.mxu2 %v1095_v34  ;;  %464 = vmatpush.msra.mxu3 %v1097_v35 }
  0x62   :  { %509 = vmatpush.msra.mxu0 %v1130_v45  ;;  %529 = vmatpush.msra.mxu1 %v1132_v46 }
  0x63   :  { %445 = vmatpush.msra.mxu2 %v1107_v38  ;;  %465 = vmatpush.msra.mxu3 %v1109_v39 }
  0x64   :  { %510 = vmatpush.msra.mxu0 %v1138_v47  ;;  %530 = vmatpush.msra.mxu1 %v1140_v48 }
  0x65   :  { %446 = vmatpush.msra.mxu2 %v1116_v41  ;;  %466 = vmatpush.msra.mxu3 %v1118_v42 }
  0x66   :  { %823 = vmatmul.msk.f32.gmra.mxu0 %vm82_vm1, %v53_v29  ;;  %832 = vmatmul.msk.f32.gmra.mxu1 %vm82_vm1, %v53_v29  ;;  %v58_v29 = vld [vmem:[%s1515_s0 + $0x30] sm:$0xff] }
  0x67   :  { %447 = vmatpush.msra.mxu2 %v1122_v43  ;;  %467 = vmatpush.msra.mxu3 %v1124_v44 }
  0x69   :  { %448 = vmatpush.msra.mxu2 %v1130_v45  ;;  %468 = vmatpush.msra.mxu3 %v1132_v46 }
  0x6b   :  { %449 = vmatpush.msra.mxu2 %v1138_v47  ;;  %469 = vmatpush.msra.mxu3 %v1140_v48 }
  0x6e   :  { %824 = vmatmul.msk.f32.gmra.mxu0 %vm82_vm1, %v54_v50  ;;  %833 = vmatmul.msk.f32.gmra.mxu1 %vm82_vm1, %v54_v50 }
  0x9f   :  { %v131_v55 = vpop.f32.mrf.mxu0  ;;  %v172_v56 = vpop.f32.mrf.mxu1 }
  0xa0   :  { %v132_v57 = vadd.f32 %v131_v55, %v1275_v52  ;;  %v173_v58 = vadd.f32 %v172_v56, %v1277_v53 }
  0xaf   :  { %v268_v59 = vpop.f32.mrf.mxu2  ;;  %v288_v62 = vpop.f32.mrf.mxu3 }
  0xb0   :  { %v291_v63 = vadd.f32 %v268_v59, %v132_v57  ;;  %v292_v10 = vadd.f32 %v288_v62, %v173_v58  ;;  %v55_v57 = vld [vmem:[%s1515_s0 + $0x18] sm:$0xff] }
  0xb1   :  { %825 = vmatmul.msk.f32.gmra.mxu0 %vm82_vm1, %v55_v57  ;;  %834 = vmatmul.msk.f32.gmra.mxu1 %vm82_vm1, %v55_v57 }
  0xb2   :  { %v293_v12 = vmul.f32 0.5, %v291_v63  ;;  %v297_v14 = vmul.f32 %v292_v10, %v1281_v61 }
  0xb4   :  { %850 = vtanh.f32 %v293_v12  ;;  %v56_v12 = vld [vmem:[%s1515_s0 + $0x20] sm:$0xff] }
  0xb5   :  { %852 = vtanh.f32 %v297_v14 }
  0xb9   :  { %826 = vmatmul.msk.f32.gmra.mxu0 %vm82_vm1, %v56_v12  ;;  %835 = vmatmul.msk.f32.gmra.mxu1 %vm82_vm1, %v56_v12 }
  0xba   :  { %v851_v15 = vpop.eup %850 }
  0xbb   :  { %v853_v16 = vpop.eup %852  ;;  %v295_v20 = vmul.f32 0.5, %v851_v15 }
  0xbc   :  { %v299_v21 = vmul.f32 %v853_v16, %v1281_v61 }
  0xbd   :  { %v296_v24 = vadd.f32 0.5, %v295_v20 }
  0xbe   :  { %v300_v25 = vadd.f32 %v299_v21, %v1284_v17 }
  0xbf   :  { %301 = vrot.lane.b32.xlu0 %v296_v24, %s958_s2 }
  0xc0   :  { %v306_v28 = vmul.f32 %v300_v25, %v296_v24  ;;  %v57_v24 = vld [vmem:[%s1515_s0 + $0x28] sm:$0xff] }
  0xc1   :  { %827 = vmatmul.msk.f32.gmra.mxu0 %vm82_vm1, %v57_v24  ;;  %836 = vmatmul.msk.f32.gmra.mxu1 %vm82_vm1, %v57_v24 }
  0xc7   :  { %303 = vrot.lane.b32.xlu0 %v300_v25, %s958_s2 }
  0xc9   :  { %828 = vmatmul.msk.f32.gmra.mxu0 %vm82_vm1, %v58_v29  ;;  %837 = vmatmul.msk.f32.gmra.mxu1 %vm82_vm1, %v58_v29 }
  0xe3   :  { %v134_v51 = vpop.f32.mrf.mxu0  ;;  %v175_v54 = vpop.f32.mrf.mxu1 }
  0xe4   :  { %v135_v55 = vadd.f32 %v134_v51, %v1275_v52  ;;  %v176_v56 = vadd.f32 %v175_v54, %v1277_v53 }
  0xeb   :  { %v178_v54 = vpop.f32.mrf.mxu1 }
 0x131   :  { %v302_v32 = vpop.permute.xlu0 %301 }
 0x132   :  { %v305_v33 = vmul.f32 0.0, %v302_v32  ;;  %v59_v32 = vld [vmem:[%s1515_s0 + $0x38] sm:$0xff] }
 0x133   :  { %829 = vmatmul.msk.f32.gmra.mxu0 %vm82_vm1, %v59_v32  ;;  %838 = vmatmul.msk.f32.gmra.mxu1 %vm82_vm1, %v59_v32 }
 0x134   :  { %v1295_v36 = vadd.f32 %v306_v28, %v305_v33 }
 0x136   :  { %854 = vtanh.f32 %v1295_v36 }
 0x139   :  { %v304_v37 = vpop.permute.xlu0 %303 }
 0x13c   :  { %v855_v40 = vpop.eup %854 }
 0x13d   :  { %v309_v49 = vmul.f32 %v855_v40, %v304_v37 }
 0x13f   :  { %328 = vmatmul.f32.vlgmr.msrb.gmra.mxu2 %v309_v49  ;;  %348 = vmatmul.f32.vlgmr.msrb.gmra.mxu3 %v309_v49 }
 0x140   :  { %556 = vmatpush.msrb.mxu2 %v995_v0  ;;  %576 = vmatpush.msrb.mxu3 %v997_v1 }
 0x142   :  { %557 = vmatpush.msrb.mxu2 %v999_v2  ;;  %577 = vmatpush.msrb.mxu3 %v1003_v3 }
 0x144   :  { %558 = vmatpush.msrb.mxu2 %v1005_v4  ;;  %578 = vmatpush.msrb.mxu3 %v1007_v5 }
 0x146   :  { %559 = vmatpush.msrb.mxu2 %v1011_v6  ;;  %579 = vmatpush.msrb.mxu3 %v1013_v7 }
 0x148   :  { %560 = vmatpush.msrb.mxu2 %v1017_v8  ;;  %580 = vmatpush.msrb.mxu3 %v1019_v9 }
 0x14a   :  { %561 = vmatpush.msrb.mxu2 %v1026_v11  ;;  %581 = vmatpush.msrb.mxu3 %v1031_v13 }
 0x14c   :  { %562 = vmatpush.msrb.mxu2 %v1047_v18  ;;  %582 = vmatpush.msrb.mxu3 %v1049_v19 }
 0x14e   :  { %563 = vmatpush.msrb.mxu2 %v1059_v22  ;;  %583 = vmatpush.msrb.mxu3 %v1061_v23 }
 0x150   :  { %564 = vmatpush.msrb.mxu2 %v1071_v26  ;;  %584 = vmatpush.msrb.mxu3 %v1073_v27 }
 0x152   :  { %565 = vmatpush.msrb.mxu2 %v1083_v30  ;;  %585 = vmatpush.msrb.mxu3 %v1085_v31 }
 0x154   :  { %566 = vmatpush.msrb.mxu2 %v1095_v34  ;;  %586 = vmatpush.msrb.mxu3 %v1097_v35 }
 0x156   :  { %567 = vmatpush.msrb.mxu2 %v1107_v38  ;;  %587 = vmatpush.msrb.mxu3 %v1109_v39 }
 0x158   :  { %568 = vmatpush.msrb.mxu2 %v1116_v41  ;;  %588 = vmatpush.msrb.mxu3 %v1118_v42 }
 0x15a   :  { %569 = vmatpush.msrb.mxu2 %v1122_v43  ;;  %589 = vmatpush.msrb.mxu3 %v1124_v44 }
 0x15c   :  { %570 = vmatpush.msrb.mxu2 %v1130_v45  ;;  %590 = vmatpush.msrb.mxu3 %v1132_v46 }
 0x15e   :  { %571 = vmatpush.msrb.mxu2 %v1138_v47  ;;  %591 = vmatpush.msrb.mxu3 %v1140_v48 }
 0x1c2   :  { %v329_v58 = vpop.f32.mrf.mxu2  ;;  %v349_v59 = vpop.f32.mrf.mxu3 }
 0x1c3   :  { %v352_v60 = vadd.f32 %v329_v58, %v135_v55  ;;  %v353_v62 = vadd.f32 %v349_v59, %v176_v56  ;;  %v1405_v56 = vpop.f32.mrf.mxu1 }
 0x1c5   :  { %v354_v63 = vmul.f32 0.5, %v352_v60  ;;  %v358_v10 = vmul.f32 %v353_v62, %v1281_v61 }
 0x1c7   :  { %856 = vtanh.f32 %v354_v63 }
 0x1c8   :  { %858 = vtanh.f32 %v358_v10 }
 0x1cb   :  { %v1409_v58 = vpop.f32.mrf.mxu1 }
 0x1cd   :  { %v857_v14 = vpop.eup %856 }
 0x1ce   :  { %v859_v15 = vpop.eup %858  ;;  %v356_v16 = vmul.f32 0.5, %v857_v14 }
 0x1cf   :  { %v360_v20 = vmul.f32 %v859_v15, %v1281_v61  ;;  %v179_v15 = vadd.f32 %v178_v54, %v1277_v53 }
 0x1d0   :  { %v357_v21 = vadd.f32 0.5, %v356_v16 }
 0x1d1   :  { %v361_v25 = vadd.f32 %v360_v20, %v1284_v17 }
 0x1d2   :  { %362 = vrot.lane.b32.xlu1 %v357_v21, %s958_s2 }
 0x1d3   :  { %v367_v28 = vmul.f32 %v361_v25, %v357_v21  ;;  %v1413_v60 = vpop.f32.mrf.mxu1 }
 0x1da   :  { %364 = vrot.lane.b32.xlu1 %v361_v25, %s958_s2 }
 0x1db   :  { %v1417_v63 = vpop.f32.mrf.mxu1 }
 0x1e3   :  { %v1421_v12 = vpop.f32.mrf.mxu1 }
 0x244   :  { %v363_v33 = vpop.permute.xlu1 %362 }
 0x245   :  { %v366_v37 = vmul.f32 %v363_v33, %v1295_v36  ;;  %v137_v36 = vpop.f32.mrf.mxu0 }
 0x246   :  { %v138_v14 = vadd.f32 %v137_v36, %v1275_v52 }
 0x247   :  { %v1368_v40 = vadd.f32 %v367_v28, %v366_v37 }
 0x249   :  { %860 = vtanh.f32 %v1368_v40 }
 0x24c   :  { %v365_v50 = vpop.permute.xlu1 %364 }
 0x24d   :  { %v1403_v55 = vpop.f32.mrf.mxu0 }
 0x24f   :  { %v861_v49 = vpop.eup %860 }
 0x250   :  { %v370_v51 = vmul.f32 %v861_v49, %v365_v50 }
 0x252   :  { %389 = vmatmul.f32.vlgmr.msrb.gmra.mxu0 %v370_v51  ;;  %409 = vmatmul.f32.vlgmr.msrb.gmra.mxu1 %v370_v51 }
 0x253   :  { %617 = vmatpush.msrb.mxu0 %v995_v0  ;;  %637 = vmatpush.msrb.mxu1 %v997_v1 }
 0x255   :  { %618 = vmatpush.msrb.mxu0 %v999_v2  ;;  %638 = vmatpush.msrb.mxu1 %v1003_v3  ;;  %v1407_v57 = vpop.f32.mrf.mxu0 }
 0x257   :  { %619 = vmatpush.msrb.mxu0 %v1005_v4  ;;  %639 = vmatpush.msrb.mxu1 %v1007_v5 }
 0x259   :  { %620 = vmatpush.msrb.mxu0 %v1011_v6  ;;  %640 = vmatpush.msrb.mxu1 %v1013_v7 }
 0x25b   :  { %621 = vmatpush.msrb.mxu0 %v1017_v8  ;;  %641 = vmatpush.msrb.mxu1 %v1019_v9 }
 0x25d   :  { %622 = vmatpush.msrb.mxu0 %v1026_v11  ;;  %642 = vmatpush.msrb.mxu1 %v1031_v13  ;;  %v1411_v59 = vpop.f32.mrf.mxu0 }
 0x25f   :  { %623 = vmatpush.msrb.mxu0 %v1047_v18  ;;  %643 = vmatpush.msrb.mxu1 %v1049_v19 }
 0x261   :  { %624 = vmatpush.msrb.mxu0 %v1059_v22  ;;  %644 = vmatpush.msrb.mxu1 %v1061_v23 }
 0x263   :  { %625 = vmatpush.msrb.mxu0 %v1071_v26  ;;  %645 = vmatpush.msrb.mxu1 %v1073_v27 }
 0x265   :  { %626 = vmatpush.msrb.mxu0 %v1083_v30  ;;  %646 = vmatpush.msrb.mxu1 %v1085_v31  ;;  %v1415_v62 = vpop.f32.mrf.mxu0 }
 0x267   :  { %627 = vmatpush.msrb.mxu0 %v1095_v34  ;;  %647 = vmatpush.msrb.mxu1 %v1097_v35 }
 0x269   :  { %628 = vmatpush.msrb.mxu0 %v1107_v38  ;;  %648 = vmatpush.msrb.mxu1 %v1109_v39 }
 0x26b   :  { %629 = vmatpush.msrb.mxu0 %v1116_v41  ;;  %649 = vmatpush.msrb.mxu1 %v1118_v42 }
 0x26d   :  { %630 = vmatpush.msrb.mxu0 %v1122_v43  ;;  %650 = vmatpush.msrb.mxu1 %v1124_v44  ;;  %v1419_v10 = vpop.f32.mrf.mxu0 }
 0x26f   :  { %631 = vmatpush.msrb.mxu0 %v1130_v45  ;;  %651 = vmatpush.msrb.mxu1 %v1132_v46 }
 0x271   :  { %632 = vmatpush.msrb.mxu0 %v1138_v47  ;;  %652 = vmatpush.msrb.mxu1 %v1140_v48 }
 0x2cf   :  { %v390_v16 = vpop.f32.mrf.mxu0  ;;  %v410_v20 = vpop.f32.mrf.mxu1 }
 0x2d0   :  { %v413_v21 = vadd.f32 %v390_v16, %v138_v14  ;;  %v414_v24 = vadd.f32 %v410_v20, %v179_v15 }
 0x2d2   :  { %v415_v25 = vmul.f32 0.5, %v413_v21  ;;  %v419_v28 = vmul.f32 %v414_v24, %v1281_v61 }
 0x2d4   :  { %862 = vtanh.f32 %v415_v25 }
 0x2d5   :  { %864 = vtanh.f32 %v419_v28 }
 0x2da   :  { %v863_v29 = vpop.eup %862 }
 0x2db   :  { %v865_v32 = vpop.eup %864  ;;  %v417_v33 = vmul.f32 0.5, %v863_v29 }
 0x2dc   :  { %v421_v37 = vmul.f32 %v865_v32, %v1281_v61  ;;  %v147_v32 = vadd.f32 %v1411_v59, %v1275_v52 }
 0x2dd   :  { %v418_v49 = vadd.f32 0.5, %v417_v33  ;;  %v188_v33 = vadd.f32 %v1413_v60, %v1277_v53 }
 0x2de   :  { %v422_v50 = vadd.f32 %v421_v37, %v1284_v17 }
 0x2df   :  { %423 = vrot.lane.b32.xlu2 %v418_v49, %s958_s2 }
 0x2e0   :  { %v428_v51 = vmul.f32 %v422_v50, %v418_v49 }
 0x2e7   :  { %425 = vrot.lane.b32.xlu2 %v422_v50, %s958_s2 }
 0x339   :  { %v424_v36 = vpop.permute.xlu2 %423 }
 0x33a   :  { %v427_v54 = vmul.f32 %v424_v36, %v1368_v40 }
 0x33c   :  { %v429_v14 = vadd.f32 %v428_v51, %v427_v54 }
 0x33e   :  { %866 = vtanh.f32 %v429_v14 }
 0x341   :  { %v426_v16 = vpop.permute.xlu2 %425 }
 0x344   :  { %v867_v15 = vpop.eup %866 }
 0x345   :  { %v431_v20 = vmul.f32 %v867_v15, %v426_v16 }
 0x347   :  { %450 = vmatmul.f32.vlgmr.msra.gmra.mxu2 %v431_v20  ;;  %470 = vmatmul.f32.vlgmr.msra.gmra.mxu3 %v431_v20 }
 0x348   :  { %678 = vmatpush.msra.mxu2 %v995_v0  ;;  %698 = vmatpush.msra.mxu3 %v997_v1  ;;  %v141_v0 = vadd.f32 %v1403_v55, %v1275_v52  ;;  %v182_v1 = vadd.f32 %v1405_v56, %v1277_v53 }
 0x34a   :  { %679 = vmatpush.msra.mxu2 %v999_v2  ;;  %699 = vmatpush.msra.mxu3 %v1003_v3 }
 0x34c   :  { %680 = vmatpush.msra.mxu2 %v1005_v4  ;;  %700 = vmatpush.msra.mxu3 %v1007_v5 }
 0x34e   :  { %681 = vmatpush.msra.mxu2 %v1011_v6  ;;  %701 = vmatpush.msra.mxu3 %v1013_v7 }
 0x350   :  { %682 = vmatpush.msra.mxu2 %v1017_v8  ;;  %702 = vmatpush.msra.mxu3 %v1019_v9 }
 0x352   :  { %683 = vmatpush.msra.mxu2 %v1026_v11  ;;  %703 = vmatpush.msra.mxu3 %v1031_v13 }
 0x354   :  { %684 = vmatpush.msra.mxu2 %v1047_v18  ;;  %704 = vmatpush.msra.mxu3 %v1049_v19 }
 0x356   :  { %685 = vmatpush.msra.mxu2 %v1059_v22  ;;  %705 = vmatpush.msra.mxu3 %v1061_v23 }
 0x358   :  { %686 = vmatpush.msra.mxu2 %v1071_v26  ;;  %706 = vmatpush.msra.mxu3 %v1073_v27 }
 0x35a   :  { %687 = vmatpush.msra.mxu2 %v1083_v30  ;;  %707 = vmatpush.msra.mxu3 %v1085_v31 }
 0x35c   :  { %688 = vmatpush.msra.mxu2 %v1095_v34  ;;  %708 = vmatpush.msra.mxu3 %v1097_v35  ;;  %v144_v35 = vadd.f32 %v1407_v57, %v1275_v52 }
 0x35e   :  { %689 = vmatpush.msra.mxu2 %v1107_v38  ;;  %709 = vmatpush.msra.mxu3 %v1109_v39  ;;  %v185_v38 = vadd.f32 %v1409_v58, %v1277_v53 }
 0x360   :  { %690 = vmatpush.msra.mxu2 %v1116_v41  ;;  %710 = vmatpush.msra.mxu3 %v1118_v42 }
 0x362   :  { %691 = vmatpush.msra.mxu2 %v1122_v43  ;;  %711 = vmatpush.msra.mxu3 %v1124_v44 }
 0x364   :  { %692 = vmatpush.msra.mxu2 %v1130_v45  ;;  %712 = vmatpush.msra.mxu3 %v1132_v46 }
 0x366   :  { %693 = vmatpush.msra.mxu2 %v1138_v47  ;;  %713 = vmatpush.msra.mxu3 %v1140_v48 }
 0x3ca   :  { %v451_v2 = vpop.f32.mrf.mxu2  ;;  %v471_v3 = vpop.f32.mrf.mxu3 }
 0x3cb   :  { %v474_v4 = vadd.f32 %v451_v2, %v141_v0  ;;  %v475_v5 = vadd.f32 %v471_v3, %v182_v1 }
 0x3cd   :  { %v476_v6 = vmul.f32 0.5, %v474_v4  ;;  %v480_v7 = vmul.f32 %v475_v5, %v1281_v61 }
 0x3cf   :  { %868 = vtanh.f32 %v476_v6 }
 0x3d0   :  { %870 = vtanh.f32 %v480_v7  ;;  %v150_v7 = vadd.f32 %v1415_v62, %v1275_v52 }
 0x3d5   :  { %v869_v8 = vpop.eup %868 }
 0x3d6   :  { %v871_v9 = vpop.eup %870  ;;  %v478_v11 = vmul.f32 0.5, %v869_v8  ;;  %v191_v8 = vadd.f32 %v1417_v63, %v1277_v53 }
 0x3d7   :  { %v482_v13 = vmul.f32 %v871_v9, %v1281_v61 }
 0x3d8   :  { %v479_v18 = vadd.f32 0.5, %v478_v11 }
 0x3d9   :  { %v483_v19 = vadd.f32 %v482_v13, %v1284_v17 }
 0x3da   :  { %484 = vrot.lane.b32.xlu0 %v479_v18, %s958_s2 }
 0x3db   :  { %486 = vrot.lane.b32.xlu1 %v483_v19, %s958_s2  ;;  %v489_v22 = vmul.f32 %v483_v19, %v479_v18 }
 0x44c   :  { %v485_v23 = vpop.permute.xlu0 %484 }
 0x44d   :  { %v488_v26 = vmul.f32 %v485_v23, %v429_v14  ;;  %v487_v31 = vpop.permute.xlu1 %486 }
 0x44f   :  { %v490_v27 = vadd.f32 %v489_v22, %v488_v26 }
 0x451   :  { %872 = vtanh.f32 %v490_v27 }
 0x457   :  { %v873_v30 = vpop.eup %872 }
 0x458   :  { %v492_v34 = vmul.f32 %v873_v30, %v487_v31 }
 0x45a   :  { %511 = vmatmul.f32.vlgmr.msra.gmra.mxu0 %v492_v34  ;;  %531 = vmatmul.f32.vlgmr.msra.gmra.mxu1 %v492_v34 }
 0x4d7   :  { %v512_v39 = vpop.f32.mrf.mxu0  ;;  %v532_v41 = vpop.f32.mrf.mxu1 }
 0x4d8   :  { %v535_v42 = vadd.f32 %v512_v39, %v144_v35  ;;  %v536_v43 = vadd.f32 %v532_v41, %v185_v38 }
 0x4da   :  { %v537_v44 = vmul.f32 0.5, %v535_v42  ;;  %v541_v45 = vmul.f32 %v536_v43, %v1281_v61  ;;  %v752_v43 = vld [vmem:[#allocation5 + $0x78] sm:$0xff] }
 0x4db   :  { %772 = vmatpush.msra.mxu0 %v752_v43 }
 0x4dc   :  { %874 = vtanh.f32 %v537_v44  ;;  %v751_v44 = vld [vmem:[#allocation5 + $0x70] sm:$0xff] }
 0x4dd   :  { %876 = vtanh.f32 %v541_v45  ;;  %v750_v45 = vld [vmem:[#allocation5 + $0x68] sm:$0xff]  ;;  %773 = vmatpush.msra.mxu0 %v751_v44 }
 0x4df   :  { %774 = vmatpush.msra.mxu0 %v750_v45 }
 0x4e2   :  { %v875_v46 = vpop.eup %874 }
 0x4e3   :  { %v877_v47 = vpop.eup %876  ;;  %v539_v48 = vmul.f32 0.5, %v875_v46  ;;  %v153_v46 = vadd.f32 %v1419_v10, %v1275_v52  ;;  %v749_v10 = vld [vmem:[#allocation5 + $0x60] sm:$0xff] }
 0x4e4   :  { %v543_v40 = vmul.f32 %v877_v47, %v1281_v61  ;;  %v194_v47 = vadd.f32 %v1421_v12, %v1277_v53  ;;  %775 = vmatpush.msra.mxu0 %v749_v10  ;;  %v748_v12 = vld [vmem:[#allocation5 + $0x58] sm:$0xff] }
 0x4e5   :  { %v540_v55 = vadd.f32 0.5, %v539_v48 }
 0x4e6   :  { %v544_v56 = vadd.f32 %v543_v40, %v1284_v17  ;;  %776 = vmatpush.msra.mxu0 %v748_v12 }
 0x4e7   :  { %545 = vrot.lane.b32.xlu2 %v540_v55, %s958_s2 }
 0x4e8   :  { %547 = vrot.lane.b32.xlu0 %v544_v56, %s958_s2  ;;  %v550_v57 = vmul.f32 %v544_v56, %v540_v55 }
 0x541   :  { %v546_v58 = vpop.permute.xlu2 %545 }
 0x542   :  { %v549_v21 = vmul.f32 %v546_v58, %v490_v27 }
 0x544   :  { %v551_v24 = vadd.f32 %v550_v57, %v549_v21 }
 0x546   :  { %878 = vtanh.f32 %v551_v24 }
 0x54c   :  { %v879_v25 = vpop.eup %878 }
 0x55a   :  { %v548_v28 = vpop.permute.xlu0 %547 }
 0x55b   :  { %v553_v29 = vmul.f32 %v879_v25, %v548_v28 }
 0x55d   :  { %572 = vmatmul.f32.vlgmr.msrb.gmra.mxu2 %v553_v29  ;;  %592 = vmatmul.f32.vlgmr.msrb.gmra.mxu3 %v553_v29 }
 0x5e0   :  { %v573_v37 = vpop.f32.mrf.mxu2  ;;  %v593_v49 = vpop.f32.mrf.mxu3 }
 0x5e1   :  { %v596_v50 = vadd.f32 %v573_v37, %v147_v32  ;;  %v597_v51 = vadd.f32 %v593_v49, %v188_v33  ;;  %v747_v32 = vld [vmem:[#allocation5 + $0x50] sm:$0xff]  ;;  %v746_v33 = vld [vmem:[#allocation5 + $0x48] sm:$0xff]  ;;  %v745_v37 = vld [vmem:[#allocation5 + $0x40] sm:$0xff] }
 0x5e2   :  { %777 = vmatpush.msra.mxu0 %v747_v32  ;;  %v744_v49 = vld [vmem:[#allocation5 + $0x38] sm:$0xff] }
 0x5e3   :  { %v598_v36 = vmul.f32 0.5, %v596_v50  ;;  %v602_v54 = vmul.f32 %v597_v51, %v1281_v61  ;;  %v742_v50 = vld [vmem:[#allocation5 + $0x28] sm:$0xff]  ;;  %v740_v51 = vld [vmem:[#allocation5 + $0x18] sm:$0xff] }
 0x5e4   :  { %778 = vmatpush.msra.mxu0 %v746_v33 }
 0x5e5   :  { %880 = vtanh.f32 %v598_v36  ;;  %v739_v36 = vld [vmem:[#allocation5 + $0x10] sm:$0xff] }
 0x5e6   :  { %882 = vtanh.f32 %v602_v54  ;;  %779 = vmatpush.msra.mxu0 %v745_v37  ;;  %v738_v54 = vld [vmem:[#allocation5 + $0x8] sm:$0xff] }
 0x5e8   :  { %780 = vmatpush.msra.mxu0 %v744_v49 }
 0x5eb   :  { %v881_v14 = vpop.eup %880 }
 0x5ec   :  { %v883_v15 = vpop.eup %882  ;;  %v600_v16 = vmul.f32 0.5, %v881_v14  ;;  %v737_v14 = vld [vmem:[#allocation5] sm:$0xff] }
 0x5ed   :  { %v604_v20 = vmul.f32 %v883_v15, %v1281_v61  ;;  %v768_v15 = vld [vmem:[#allocation5 + $0xf8] sm:$0xff] }
 0x5ee   :  { %v601_v0 = vadd.f32 0.5, %v600_v16  ;;  %v767_v16 = vld [vmem:[#allocation5 + $0xf0] sm:$0xff]  ;;  %794 = vmatpush.msra.mxu1 %v768_v15 }
 0x5ef   :  { %v605_v59 = vadd.f32 %v604_v20, %v1284_v17  ;;  %v766_v20 = vld [vmem:[#allocation5 + $0xe8] sm:$0xff] }
 0x5f0   :  { %606 = vrot.lane.b32.xlu1 %v601_v0, %s958_s2  ;;  %795 = vmatpush.msra.mxu1 %v767_v16 }
 0x5f1   :  { %608 = vrot.lane.b32.xlu2 %v605_v59, %s958_s2  ;;  %v611_v60 = vmul.f32 %v605_v59, %v601_v0  ;;  %v765_v0 = vld [vmem:[#allocation5 + $0xe0] sm:$0xff]  ;;  %v764_v59 = vld [vmem:[#allocation5 + $0xd8] sm:$0xff] }
 0x5f2   :  { %796 = vmatpush.msra.mxu1 %v766_v20 }
 0x5f4   :  { %797 = vmatpush.msra.mxu1 %v765_v0 }
 0x5f6   :  { %798 = vmatpush.msra.mxu1 %v764_v59 }
 0x64b   :  { %v609_v5 = vpop.permute.xlu2 %608 }
 0x662   :  { %v607_v1 = vpop.permute.xlu1 %606 }
 0x663   :  { %v610_v2 = vmul.f32 %v607_v1, %v551_v24  ;;  %v762_v1 = vld [vmem:[#allocation5 + $0xc8] sm:$0xff] }
 0x665   :  { %v612_v3 = vadd.f32 %v611_v60, %v610_v2  ;;  %v763_v60 = vld [vmem:[#allocation5 + $0xd0] sm:$0xff] }
 0x666   :  { %799 = vmatpush.msra.mxu1 %v763_v60 }
 0x667   :  { %884 = vtanh.f32 %v612_v3 }
 0x668   :  { %800 = vmatpush.msra.mxu1 %v762_v1 }
 0x66d   :  { %v885_v4 = vpop.eup %884 }
 0x66e   :  { %v614_v6 = vmul.f32 %v885_v4, %v609_v5  ;;  %v760_v4 = vld [vmem:[#allocation5 + $0xb8] sm:$0xff] }
 0x670   :  { %633 = vmatmul.f32.vlgmr.msrb.gmra.mxu0 %v614_v6  ;;  %653 = vmatmul.f32.vlgmr.msrb.gmra.mxu1 %v614_v6  ;;  %v759_v6 = vld [vmem:[#allocation5 + $0xb0] sm:$0xff] }
 0x6ed   :  { %v634_v9 = vpop.f32.mrf.mxu0  ;;  %v654_v11 = vpop.f32.mrf.mxu1 }
 0x6ee   :  { %v657_v13 = vadd.f32 %v634_v9, %v150_v7  ;;  %v658_v18 = vadd.f32 %v654_v11, %v191_v8  ;;  %v758_v7 = vld [vmem:[#allocation5 + $0xa8] sm:$0xff]  ;;  %v757_v9 = vld [vmem:[#allocation5 + $0xa0] sm:$0xff]  ;;  %v756_v11 = vld [vmem:[#allocation5 + $0x98] sm:$0xff] }
 0x6f0   :  { %v659_v19 = vmul.f32 0.5, %v657_v13  ;;  %v663_v22 = vmul.f32 %v658_v18, %v1281_v61 }
 0x6f2   :  { %886 = vtanh.f32 %v659_v19 }
 0x6f3   :  { %888 = vtanh.f32 %v663_v22  ;;  %v755_v22 = vld [vmem:[#allocation5 + $0x90] sm:$0xff] }
 0x6f8   :  { %v887_v23 = vpop.eup %886 }
 0x6f9   :  { %v889_v26 = vpop.eup %888  ;;  %v661_v27 = vmul.f32 0.5, %v887_v23  ;;  %v754_v23 = vld [vmem:[#allocation5 + $0x88] sm:$0xff] }
 0x6fa   :  { %v665_v30 = vmul.f32 %v889_v26, %v1281_v61  ;;  %v753_v26 = vld [vmem:[#allocation5 + $0x80] sm:$0xff] }
 0x6fb   :  { %v662_v31 = vadd.f32 0.5, %v661_v27  ;;  %v848_v27 = vld [vmem:[#allocation5 + $0x100] ss:$0 sm:$0xff] }
 0x6fc   :  { %v666_v62 = vadd.f32 %v665_v30, %v1284_v17 }
 0x6fd   :  { %667 = vrot.lane.b32.xlu0 %v662_v31, %s958_s2 }
 0x6fe   :  { %669 = vrot.lane.b32.xlu1 %v666_v62, %s958_s2  ;;  %v672_v63 = vmul.f32 %v666_v62, %v662_v31 }
 0x76f   :  { %v668_v34 = vpop.permute.xlu0 %667 }
 0x770   :  { %v671_v35 = vmul.f32 %v668_v34, %v612_v3  ;;  %v670_v41 = vpop.permute.xlu1 %669  ;;  %v761_v3 = vld [vmem:[#allocation5 + $0xc0] sm:$0xff] }
 0x771   :  { %801 = vmatpush.msra.mxu1 %v761_v3 }
 0x772   :  { %v1499_v38 = vadd.f32 %v672_v63, %v671_v35  ;;  %v849_v63 = vld [vmem:[#allocation5 + $0x101] ss:$0 sm:$0xff] }
 0x773   :  { %802 = vmatpush.msra.mxu1 %v760_v4 }
 0x774   :  { %890 = vtanh.f32 %v1499_v38 }
 0x775   :  { %803 = vmatpush.msra.mxu1 %v759_v6 }
 0x777   :  { %804 = vmatpush.msra.mxu1 %v758_v7 }
 0x779   :  { %805 = vmatpush.msra.mxu1 %v757_v9 }
 0x77a   :  { %v891_v39 = vpop.eup %890 }
 0x77b   :  { %v675_v42 = vmul.f32 %v891_v39, %v670_v41  ;;  %806 = vmatpush.msra.mxu1 %v756_v11 }
 0x77d   :  { %694 = vmatmul.f32.vlgmr.msra.gmra.mxu2 %v675_v42  ;;  %714 = vmatmul.f32.vlgmr.msra.gmra.mxu3 %v675_v42 }
 0x77e   :  { %807 = vmatpush.msra.mxu1 %v755_v22 }
 0x780   :  { %808 = vmatpush.msra.mxu1 %v754_v23 }
 0x782   :  { %809 = vmatpush.msra.mxu1 %v753_v26 }
 0x800   :  { %v695_v48 = vpop.f32.mrf.mxu2  ;;  %v715_v40 = vpop.f32.mrf.mxu3 }
 0x801   :  { %v718_v55 = vadd.f32 %v695_v48, %v153_v46  ;;  %v719_v56 = vadd.f32 %v715_v40, %v194_v47 }
 0x803   :  { %v720_v57 = vmul.f32 0.5, %v718_v55  ;;  %v724_v58 = vmul.f32 %v719_v56, %v1281_v61 }
 0x805   :  { %892 = vtanh.f32 %v720_v57 }
 0x806   :  { %894 = vtanh.f32 %v724_v58 }
 0x80b   :  { %v893_v21 = vpop.eup %892 }
 0x80c   :  { %v895_v24 = vpop.eup %894  ;;  %v722_v25 = vmul.f32 0.5, %v893_v21 }
 0x80d   :  { %v726_v28 = vmul.f32 %v895_v24, %v1281_v61  ;;  %v743_v61 = vld [vmem:[#allocation5 + $0x30] sm:$0xff] }
 0x80e   :  { %v723_v29 = vadd.f32 0.5, %v722_v25  ;;  %781 = vmatpush.msra.mxu0 %v743_v61 }
 0x80f   :  { %v727_v52 = vadd.f32 %v726_v28, %v1284_v17  ;;  %v741_v17 = vld [vmem:[#allocation5 + $0x20] sm:$0xff] }
 0x810   :  { %728 = vrot.lane.b32.xlu2 %v723_v29, %s958_s2  ;;  %782 = vmatpush.msra.mxu0 %v742_v50 }
 0x811   :  { %730 = vrot.lane.b32.xlu0 %v727_v52, %s958_s2  ;;  %v733_v53 = vmul.f32 %v727_v52, %v723_v29 }
 0x812   :  { %783 = vmatpush.msra.mxu0 %v741_v17 }
 0x814   :  { %784 = vmatpush.msra.mxu0 %v740_v51 }
 0x816   :  { %785 = vmatpush.msra.mxu0 %v739_v36 }
 0x818   :  { %786 = vmatpush.msra.mxu0 %v738_v54 }
 0x81a   :  { %787 = vmatpush.msra.mxu0 %v737_v14 }
 0x86a   :  { %v729_v2 = vpop.permute.xlu2 %728 }
 0x86b   :  { %v732_v5 = vmul.f32 %v729_v2, %v1499_v38 }
 0x86d   :  { %v734_v8 = vadd.f32 %v733_v53, %v732_v5 }
 0x86f   :  { %896 = vtanh.f32 %v734_v8 }
 0x875   :  { %v897_v13 = vpop.eup %896 }
 0x883   :  { %v731_v18 = vpop.permute.xlu0 %730 }
 0x884   :  { %v736_v19 = vmul.f32 %v897_v13, %v731_v18 }
 0x886   :  { %788 = vmatmul.f32.vlgmr.msra.gmra.mxu0 %v736_v19 }
 0x903   :  { %v789_v30 = vpop.f32.mrf.mxu0 }
 0x904   :  { %v790_v31 = vadd.f32 %v848_v27, %v789_v30 }
 0x906   :  { %v792_v62 = vmax.f32 %v790_v31, 0.0 }
 0x908   :  { %810 = vmatmul.f32.vlgmr.msra.gmra.mxu1 %v792_v62 }
 0x985   :  { %v811_v34 = vpop.f32.mrf.mxu1 }
 0x986   :  { %v812_v35 = vadd.f32 %v849_v63, %v811_v34 }
 0x988   :  { %814 = vst [vmem:[%s1520_s5] sm:$0xff] %v812_v35 }
 0x989   :  { %819 = vsyncpa [#allocation4], 1 }
 0x98a   :  { %820 = vsyncpa [#allocation6], 1 }

</bundles_post_ra>
